<compile_context>
chip_gen: v7x
topology: tpu7x:2x2x1
jax: 0.10.0
libtpu: 0.0.40
codegen_flags: <defaults>
</compile_context>

<pallas_src>
import jax
import jax.numpy as jnp
from jax.experimental import pallas as pl
from jax.experimental.pallas import tpu as pltpu

BN_EPS = 1e-5
IN_DIM = 128
HID_DIM = 64
OUT_DIM = 10
HID_PAD = 128   # lane-dense hidden width (zero-padded params/weights)


def label_classifier_kernel(x_ref, w_ref, p_ref, o_ref):
    x = x_ref[...]                                             # (B, 128) f32

    # Stacked weights: rows [0,128) = w1 (128 -> 128-padded hidden),
    #                  rows [128,256) = w2 (128-padded hidden -> 128-padded out)
    w1 = w_ref[0:IN_DIM, :]                                    # (128, 128)
    w2 = w_ref[IN_DIM:IN_DIM + HID_PAD, :]                     # (128, 128)

    # Packed parameter rows (each (1, 128), zero in padded lanes).
    b1 = p_ref[0:1, :]
    gamma = p_ref[1:2, :]
    beta = p_ref[2:3, :]
    b2 = p_ref[3:4, :]

    # ---- fc1 + ReLU (padded hidden lanes are exactly 0)
    h = jnp.dot(x, w1, preferred_element_type=jnp.float32)
    h = jnp.maximum(h + b1, 0.0)                               # (B, 128)

    # ---- BatchNorm1d train-mode batch statistics, single pass:
    #      mean = E[h], var = max(E[h^2] - mean^2, 0)  (guard tiny negatives)
    inv_b = 1.0 / x_ref.shape[0]                               # static batch size
    mean = jnp.sum(h, axis=0, keepdims=True) * inv_b           # (1, 128)
    ex2 = jnp.sum(h * h, axis=0, keepdims=True) * inv_b        # (1, 128)
    var = jnp.maximum(ex2 - mean * mean, 0.0)

    # ---- Fold BN affine: h_bn = h*scale + shift with
    #      scale = gamma*rsqrt(var+eps), shift = beta - mean*scale
    scale = gamma * jax.lax.rsqrt(var + BN_EPS)                # 0 in pad lanes
    shift = beta - mean * scale                                # 0 in pad lanes
    h_bn = h * scale + shift                                   # (B, 128)

    # ---- fc2: single MXU pass through w2; b2 is zero in pad lanes.
    out = jnp.dot(h_bn, w2, preferred_element_type=jnp.float32) + b2   # (B, 128)

    # Real logits live in the first 10 lanes; store (B, 10) directly.
    o_ref[...] = out[:, :OUT_DIM]


def label_classifier(x, w_stack, params):
    """x: (B, 128) f32; w_stack: (256, 128); params: (8, 128). Returns (B, 10)."""
    B = x.shape[0]
    flops = 2 * B * IN_DIM * HID_PAD + 2 * B * HID_PAD * HID_PAD + 10 * B * HID_PAD
    bytes_accessed = 4 * (x.size + w_stack.size + params.size + B * OUT_DIM)
    return pl.pallas_call(
        label_classifier_kernel,
        out_shape=jax.ShapeDtypeStruct((B, OUT_DIM), jnp.float32),
        in_specs=[
            pl.BlockSpec(x.shape, lambda: (0, 0)),
            pl.BlockSpec(w_stack.shape, lambda: (0, 0)),
            pl.BlockSpec(params.shape, lambda: (0, 0)),
        ],
        out_specs=pl.BlockSpec((B, OUT_DIM), lambda: (0, 0)),
        cost_estimate=pl.CostEstimate(
            flops=flops, transcendentals=HID_PAD, bytes_accessed=bytes_accessed),
        compiler_params=pltpu.CompilerParams(vmem_limit_bytes=4 * 1024 * 1024),
    )(x, w_stack, params)


def init_params(key):
    """PyTorch-equivalent (unpadded) parameters; weights stored as (in, out)."""
    k_w1, k_b1, k_w2, k_b2 = jax.random.split(key, 4)
    # nn.init.normal_(weight, 0.0, 0.02); stored transposed as (in, out)
    w1 = 0.02 * jax.random.normal(k_w1, (IN_DIM, HID_DIM), dtype=jnp.float32)
    w2 = 0.02 * jax.random.normal(k_w2, (HID_DIM, OUT_DIM), dtype=jnp.float32)
    # PyTorch Linear default bias init: U(-1/sqrt(fan_in), 1/sqrt(fan_in))
    b1 = jax.random.uniform(k_b1, (1, HID_DIM), dtype=jnp.float32,
                            minval=-1.0 / jnp.sqrt(float(IN_DIM)),
                            maxval=1.0 / jnp.sqrt(float(IN_DIM)))
    b2 = jax.random.uniform(k_b2, (1, OUT_DIM), dtype=jnp.float32,
                            minval=-1.0 / jnp.sqrt(float(HID_DIM)),
                            maxval=1.0 / jnp.sqrt(float(HID_DIM)))
    # BatchNorm1d affine params
    gamma = jnp.ones((1, HID_DIM), dtype=jnp.float32)
    beta = jnp.zeros((1, HID_DIM), dtype=jnp.float32)
    return w1, b1, gamma, beta, w2, b2


def pack_params(w1, b1, gamma, beta, w2, b2):
    """Zero-pad and stack params into the kernel's two lane-dense slabs.

    Correctness of the BN folding requires the PADDED lanes of gamma/beta/b2
    to be exactly 0 (not 1) and the padded rows/cols of w1/w2 to be 0 — the
    zeros-init below guarantees it.
    """
    assert w1.shape == (IN_DIM, HID_DIM) and w2.shape == (HID_DIM, OUT_DIM)
    assert b1.shape == (1, HID_DIM) and gamma.shape == (1, HID_DIM)
    assert beta.shape == (1, HID_DIM) and b2.shape == (1, OUT_DIM)
    f32 = jnp.float32
    w_stack = jnp.zeros((IN_DIM + HID_PAD, HID_PAD), f32)
    w_stack = w_stack.at[:IN_DIM, :HID_DIM].set(w1)
    w_stack = w_stack.at[IN_DIM:IN_DIM + HID_DIM, :OUT_DIM].set(w2)
    params = jnp.zeros((8, HID_PAD), f32)
    params = params.at[0, :HID_DIM].set(b1[0])
    params = params.at[1, :HID_DIM].set(gamma[0])   # pad lanes stay 0 -> scale=0
    params = params.at[2, :HID_DIM].set(beta[0])
    params = params.at[3, :OUT_DIM].set(b2[0])
    return w_stack, params


def reference(x, w1, b1, gamma, beta, w2, b2):
    """Pure-JAX f32 reference matching the PyTorch module (train-mode BN)."""
    h = jnp.maximum(x @ w1 + b1, 0.0)
    mean = jnp.mean(h, axis=0, keepdims=True)
    var = jnp.mean((h - mean) ** 2, axis=0, keepdims=True)
    h = (h - mean) / jnp.sqrt(var + BN_EPS) * gamma + beta
    return h @ w2 + b2


if __name__ == "__main__":
    key = jax.random.PRNGKey(0)
    k_params, k_x = jax.random.split(key)
    params_raw = init_params(k_params)
    w_stack, params = pack_params(*params_raw)

    B = 8
    x = jax.random.normal(k_x, (B, IN_DIM), dtype=jnp.float32)

    out = label_classifier(x, w_stack, params)
    out = jax.block_until_ready(out)

    ref = reference(x, *params_raw)
    assert out.shape == (B, OUT_DIM)
    assert jnp.allclose(out, ref, atol=1e-4, rtol=1e-4)
    print("KERNEL_OK")
</pallas_src>

<mosaic_0001>
module attributes {stable_mosaic.version = 11 : i64} {
  func.func @label_classifier_kernel(%arg0: memref<8x128xf32, #tpu.memory_space<vmem>>, %arg1: memref<256x128xf32, #tpu.memory_space<vmem>>, %arg2: memref<8x128xf32, #tpu.memory_space<vmem>>, %arg3: memref<8x10xf32, #tpu.memory_space<vmem>>) attributes {dimension_semantics = [], scalar_prefetch = 0 : i64, scratch_operands = 0 : i64, tpu.core_type = #tpu.core_type<tc>} {
    %c0 = arith.constant 0 : index
    %c0_0 = arith.constant 0 : index
    %0 = vector.load %arg0[%c0, %c0_0] : memref<8x128xf32, #tpu.memory_space<vmem>>, vector<8x128xf32>
    %c0_1 = arith.constant 0 : index
    %c0_2 = arith.constant 0 : index
    %1 = vector.load %arg1[%c0_1, %c0_2] : memref<256x128xf32, #tpu.memory_space<vmem>>, vector<128x128xf32>
    %c128 = arith.constant 128 : index
    %c0_3 = arith.constant 0 : index
    %2 = vector.load %arg1[%c128, %c0_3] : memref<256x128xf32, #tpu.memory_space<vmem>>, vector<128x128xf32>
    %c0_4 = arith.constant 0 : index
    %c0_5 = arith.constant 0 : index
    %3 = vector.load %arg2[%c0_4, %c0_5] : memref<8x128xf32, #tpu.memory_space<vmem>>, vector<1x128xf32>
    %c1 = arith.constant 1 : index
    %c0_6 = arith.constant 0 : index
    %4 = vector.load %arg2[%c1, %c0_6] : memref<8x128xf32, #tpu.memory_space<vmem>>, vector<1x128xf32>
    %c2 = arith.constant 2 : index
    %c0_7 = arith.constant 0 : index
    %5 = vector.load %arg2[%c2, %c0_7] : memref<8x128xf32, #tpu.memory_space<vmem>>, vector<1x128xf32>
    %c3 = arith.constant 3 : index
    %c0_8 = arith.constant 0 : index
    %6 = vector.load %arg2[%c3, %c0_8] : memref<8x128xf32, #tpu.memory_space<vmem>>, vector<1x128xf32>
    %cst = arith.constant dense<0.000000e+00> : vector<8x128xf32>
    %7 = tpu.matmul %0, %1, %cst {dimension_numbers = #tpu.dot_dimension_numbers<[1], [0], [0], [1], [0, 0, 1, 1], [], []>} : vector<8x128xf32>, vector<128x128xf32>, vector<8x128xf32> -> vector<8x128xf32>
    %8 = vector.broadcast %3 : vector<1x128xf32> to vector<8x128xf32>
    %9 = arith.addf %7, %8 : vector<8x128xf32>
    %cst_9 = arith.constant 0.000000e+00 : f32
    %10 = vector.broadcast %cst_9 : f32 to vector<8x128xf32>
    %11 = arith.maximumf %9, %10 : vector<8x128xf32>
    %cst_10 = arith.constant dense<0.000000e+00> : vector<128xf32>
    %12 = vector.multi_reduction <add>, %11, %cst_10 [0] : vector<8x128xf32> to vector<128xf32>
    %13 = vector.shape_cast %12 : vector<128xf32> to vector<1x128xf32>
    %cst_11 = arith.constant 1.250000e-01 : f32
    %14 = vector.broadcast %cst_11 : f32 to vector<1x128xf32>
    %15 = arith.mulf %13, %14 : vector<1x128xf32>
    %16 = arith.mulf %11, %11 : vector<8x128xf32>
    %cst_12 = arith.constant dense<0.000000e+00> : vector<128xf32>
    %17 = vector.multi_reduction <add>, %16, %cst_12 [0] : vector<8x128xf32> to vector<128xf32>
    %18 = vector.shape_cast %17 : vector<128xf32> to vector<1x128xf32>
    %cst_13 = arith.constant 1.250000e-01 : f32
    %19 = vector.broadcast %cst_13 : f32 to vector<1x128xf32>
    %20 = arith.mulf %18, %19 : vector<1x128xf32>
    %21 = arith.mulf %15, %15 : vector<1x128xf32>
    %22 = arith.subf %20, %21 : vector<1x128xf32>
    %cst_14 = arith.constant 0.000000e+00 : f32
    %23 = vector.broadcast %cst_14 : f32 to vector<1x128xf32>
    %24 = arith.maximumf %22, %23 : vector<1x128xf32>
    %cst_15 = arith.constant 9.99999974E-6 : f32
    %25 = vector.broadcast %cst_15 : f32 to vector<1x128xf32>
    %26 = arith.addf %24, %25 : vector<1x128xf32>
    %27 = math.rsqrt %26 : vector<1x128xf32>
    %28 = arith.mulf %4, %27 : vector<1x128xf32>
    %29 = arith.mulf %15, %28 : vector<1x128xf32>
    %30 = arith.subf %5, %29 : vector<1x128xf32>
    %31 = vector.broadcast %28 : vector<1x128xf32> to vector<8x128xf32>
    %32 = arith.mulf %11, %31 : vector<8x128xf32>
    %33 = vector.broadcast %30 : vector<1x128xf32> to vector<8x128xf32>
    %34 = arith.addf %32, %33 : vector<8x128xf32>
    %cst_16 = arith.constant dense<0.000000e+00> : vector<8x128xf32>
    %35 = tpu.matmul %34, %2, %cst_16 {dimension_numbers = #tpu.dot_dimension_numbers<[1], [0], [0], [1], [0, 0, 1, 1], [], []>} : vector<8x128xf32>, vector<128x128xf32>, vector<8x128xf32> -> vector<8x128xf32>
    %36 = vector.broadcast %6 : vector<1x128xf32> to vector<8x128xf32>
    %37 = arith.addf %35, %36 : vector<8x128xf32>
    %38 = vector.extract_strided_slice %37 {offsets = [0, 0], sizes = [8, 10], strides = [1, 1]} : vector<8x128xf32> to vector<8x10xf32>
    %c0_17 = arith.constant 0 : index
    %c0_18 = arith.constant 0 : index
    %39 = vector.load %arg3[%c0_17, %c0_18] : memref<8x10xf32, #tpu.memory_space<vmem>>, vector<8x10xf32>
    tpu.vector_store %arg3[%c0_17, %c0_18], %38 {strides = array<i32>} : memref<8x10xf32, #tpu.memory_space<vmem>>, vector<8x10xf32>,
    return
  }
}

</mosaic_0001>

<bundles_post_ra>
// kernel: tpu_custom_call.1
= control target key start
LH: loop header
LB: loop body
LE: loop exit
PB: predicated region body
PF: predicated region fallthrough
CT: control target
= control target key end

     0   :  { %8 = vsyncpa [#allocation3], 0  ;;  %s641_s0 = inlined_call_operand.hbm [shape: f32[8,128], index: 0, kind: input, shape index: {}]   ;;  %s642_s1 = inlined_call_operand.hbm [shape: f32[256,128], index: 1, kind: input, shape index: {}]   ;;  %s643_s2 = inlined_call_operand.hbm [shape: f32[8,128], index: 2, kind: input, shape index: {}]   ;;  %s644_s3 = inlined_call_operand.hbm [shape: f32[8,10], index: 3, kind: output, shape index: {}]  }
   0x1   :  { %9 = vsyncpa [#allocation6], 0 }
   0x2   :  { %10 = vsyncpa [#allocation4], 0  ;;  %s548_s12 = smov [#allocation5]   ;;  %s454_s16 = scalar_lea.hbm %s642_s1, 4096 }
   0x3   :  { %s26_s13 = sshll.u32 %s548_s12, 4  ;;  %p455_p0 = scmp.ne.s32.totalorder %s642_s1, %s454_s16  ;;  %s27_s13 = int_to_ptr.vmem [resolvable:$true] %s26_s13 }
   0x4   :  { %p458_p1 = scmp.lt.u32.totalorder %s454_s16, %s642_s1 }
   0x6   :  { %p460_p2 = pnand %p458_p1, %p455_p0 }
   0x8   :  { %463 = shalt.err (!%p460_p2)
}
   0x9   :  { %s464_s21 = scalar_lea.vmem %s27_s13, 4096  ;;  %p469_p4 = scmp.lt.s32.totalorder %s27_s13, %s27_s13 }
   0xa   :  { %p465_p3 = scmp.ne.s32.totalorder %s27_s13, %s464_s21  ;;  %p470_p5 = scmp.lt.s32.totalorder %s464_s21, %s464_s21 }
   0xc   :  { %p471_p6 = por %p470_p5, %p469_p4 }
   0xe   :  { %p472_p7 = pnand %p471_p6, %p465_p3 }
  0x10   :  { %475 = shalt.err (!%p472_p7)
}
  0x11   :  { %s549_s22 = smov 128   ;;  %s550_s23 = smov 8  }
  0x12   :  { %32 = dma.hbm_to_vmem [thread:$0]  %s642_s1, 4096, %s27_s13, [#allocation6], %s549_s22, %s549_s22, %s550_s23  }
  0x13   :  { %s551_s26 = smov [#allocation2]   ;;  %s552_s28 = smov [#allocation7]  }
  0x14   :  { %s17_s27 = sshll.u32 %s551_s26, 4  ;;  %s39_s29 = sshll.u32 %s552_s28, 4  ;;  %s18_s27 = int_to_ptr.vmem [resolvable:$true] %s17_s27  ;;  %s40_s29 = int_to_ptr.vmem [resolvable:$true] %s39_s29 }
  0x15   :  { %s476_s5 = scalar_lea.hbm %s641_s0, 128 }
  0x16   :  { %p477_p8 = scmp.ne.s32.totalorder %s641_s0, %s476_s5  ;;  %p480_p9 = scmp.lt.u32.totalorder %s476_s5, %s641_s0 }
  0x18   :  { %p482_p10 = pnand %p480_p9, %p477_p8 }
  0x1a   :  { %485 = shalt.err (!%p482_p10)
}
  0x1b   :  { %s486_s1 = scalar_lea.vmem %s18_s27, 128  ;;  %p491_p12 = scmp.lt.s32.totalorder %s18_s27, %s18_s27 }
  0x1c   :  { %p487_p11 = scmp.ne.s32.totalorder %s18_s27, %s486_s1  ;;  %p492_p13 = scmp.lt.s32.totalorder %s486_s1, %s486_s1 }
  0x1e   :  { %p493_p0 = por %p492_p13, %p491_p12 }
  0x20   :  { %p494_p1 = pnand %p493_p0, %p487_p11 }
  0x22   :  { %497 = shalt.err (!%p494_p1)
}
  0x23   :  { %20 = dma.hbm_to_vmem [thread:$0]  %s641_s0, 128, %s18_s27, [#allocation3]  }
  0x24   :  { %s498_s14 = scalar_lea.hbm %s643_s2, 128 }
  0x25   :  { %p499_p2 = scmp.ne.s32.totalorder %s643_s2, %s498_s14  ;;  %p502_p3 = scmp.lt.u32.totalorder %s498_s14, %s643_s2 }
  0x27   :  { %p504_p4 = pnand %p502_p3, %p499_p2 }
  0x29   :  { %507 = shalt.err (!%p504_p4)
}
  0x2a   :  { %s508_s19 = scalar_lea.vmem %s40_s29, 128  ;;  %p513_p6 = scmp.lt.s32.totalorder %s40_s29, %s40_s29 }
  0x2b   :  { %p509_p5 = scmp.ne.s32.totalorder %s40_s29, %s508_s19  ;;  %p514_p7 = scmp.lt.s32.totalorder %s508_s19, %s508_s19 }
  0x2d   :  { %p515_p8 = por %p514_p7, %p513_p6 }
  0x2f   :  { %p516_p9 = pnand %p515_p8, %p509_p5 }
  0x31   :  { %519 = shalt.err (!%p516_p9)
}
  0x32   :  { %42 = dma.hbm_to_vmem [thread:$0]  %s643_s2, 128, %s40_s29, [#allocation6]  }
  0x33   :  { %542 = dma.done.wait [#allocation3], 128  }
  0x34   :  { %543 = vsyncadd [#allocation3], 4294967168 }
  0x35   :  { %544 = dma.done.wait [#allocation6], 4224  }
  0x36   :  { %545 = vsyncadd [#allocation6], 4294963072  ;;  %v553_v0 = vmov 0.0|0.0   ;;  %vm554_vm0 = vmmov 0   ;;  %v555_v1 = vmov 0.0   ;;  %v53_v2 = vld [vmem:[#allocation5] sm:$0xff] }
  0x37   :  { %395 = vmatprep.subr.bf16.mxu0 %v553_v0  ;;  %357 = vmatprep.mubr.msk.f32.mxu0 %vm554_vm0, %v555_v1  ;;  %v54_v3 = vld [vmem:[#allocation5 + $0x8] sm:$0xff]  ;;  %v55_v4 = vld [vmem:[#allocation5 + $0x10] sm:$0xff]  ;;  %v56_v6 = vld [vmem:[#allocation5 + $0x18] sm:$0xff]  ;;  %s556_s2 = smov [#allocation8]   ;;  %vm271_vm1 = vcmask 80896  }
  0x38   :  { %419 = vmatprep.subr.bf16.mxu1 %v553_v0  ;;  %392 = vmatprep.mubr.msk.f32.mxu1 %vm554_vm0, %v555_v1  ;;  %v396_v5 = vpack.c.bf16 %v54_v3, %v53_v2  ;;  %v399_v7 = vpack.c.bf16 %v56_v6, %v55_v4  ;;  %v57_v8 = vld [vmem:[#allocation5 + $0x20] sm:$0xff]  ;;  %v58_v9 = vld [vmem:[#allocation5 + $0x28] sm:$0xff]  ;;  %v59_v11 = vld [vmem:[#allocation5 + $0x30] sm:$0xff]  ;;  %s279_s21 = sshll.u32 %s556_s2, 4  ;;  %s280_s21 = int_to_ptr.vmem [resolvable:$true] %s279_s21 }
  0x39   :  { %v402_v10 = vpack.c.bf16 %v58_v9, %v57_v8  ;;  %v60_v12 = vld [vmem:[#allocation5 + $0x38] sm:$0xff]  ;;  %v61_v14 = vld [vmem:[#allocation5 + $0x40] sm:$0xff]  ;;  %v62_v15 = vld [vmem:[#allocation5 + $0x48] sm:$0xff]  ;;  %s520_s22 = scalar_lea.vmem %s280_s21, 128  ;;  %p525_p11 = scmp.lt.s32.totalorder %s280_s21, %s280_s21 }
  0x3a   :  { %397 = vmatpush3.bf16.msra.mxu0 %v396_v5  ;;  %v405_v13 = vpack.c.bf16 %v60_v12, %v59_v11  ;;  %v408_v16 = vpack.c.bf16 %v62_v15, %v61_v14  ;;  %v63_v17 = vld [vmem:[#allocation5 + $0x50] sm:$0xff]  ;;  %v64_v18 = vld [vmem:[#allocation5 + $0x58] sm:$0xff]  ;;  %v65_v20 = vld [vmem:[#allocation5 + $0x60] sm:$0xff]  ;;  %v187_v11 = vlaneseq  ;;  %p521_p10 = scmp.ne.s32.totalorder %s280_s21, %s520_s22  ;;  %p526_p12 = scmp.lt.s32.totalorder %s520_s22, %s520_s22 }
  0x3b   :  { %398 = vmatprep.subr.bf16.mxu0 %v553_v0  ;;  %v411_v19 = vpack.c.bf16 %v64_v18, %v63_v17  ;;  %v66_v21 = vld [vmem:[#allocation5 + $0x68] sm:$0xff]  ;;  %v67_v23 = vld [vmem:[#allocation5 + $0x70] sm:$0xff]  ;;  %v68_v24 = vld [vmem:[#allocation5 + $0x78] sm:$0xff] }
  0x3c   :  { %v414_v22 = vpack.c.bf16 %v66_v21, %v65_v20  ;;  %v417_v25 = vpack.c.bf16 %v68_v24, %v67_v23  ;;  %v52_v26 = vld [vmem:[#allocation2] sm:$0xff]  ;;  %v69_v27 = vld [vmem:[#allocation5 + $0x80] sm:$0xff]  ;;  %v70_v28 = vld [vmem:[#allocation5 + $0x88] sm:$0xff]  ;;  %v188_v12 = vshrl.u32 %v187_v11, 7  ;;  %p527_p13 = por %p526_p12, %p525_p11 }
  0x3d   :  { %v420_v29 = vpack.c.bf16 %v70_v28, %v69_v27  ;;  %v71_v30 = vld [vmem:[#allocation5 + $0x90] sm:$0xff]  ;;  %v72_v31 = vld [vmem:[#allocation5 + $0x98] sm:$0xff]  ;;  %v73_v33 = vld [vmem:[#allocation5 + $0xa0] sm:$0xff] }
  0x3e   :  { %400 = vmatpush3.bf16.msra.mxu0 %v399_v7  ;;  %v423_v32 = vpack.c.bf16 %v72_v31, %v71_v30  ;;  %v74_v34 = vld [vmem:[#allocation5 + $0xa8] sm:$0xff]  ;;  %v75_v36 = vld [vmem:[#allocation5 + $0xb0] sm:$0xff]  ;;  %v76_v37 = vld [vmem:[#allocation5 + $0xb8] sm:$0xff]  ;;  %v189_v14 = vsub.s32 0, %v188_v12  ;;  %p528_p0 = pnand %p527_p13, %p521_p10 }
  0x3f   :  { %401 = vmatprep.subr.bf16.mxu0 %v553_v0  ;;  %421 = vmatpush3.bf16.msra.mxu1 %v420_v29  ;;  %v426_v35 = vpack.c.bf16 %v74_v34, %v73_v33  ;;  %v429_v38 = vpack.c.bf16 %v76_v37, %v75_v36  ;;  %v77_v39 = vld [vmem:[#allocation5 + $0xc0] sm:$0xff]  ;;  %v78_v40 = vld [vmem:[#allocation5 + $0xc8] sm:$0xff]  ;;  %v79_v42 = vld [vmem:[#allocation5 + $0xd0] sm:$0xff] }
  0x40   :  { %422 = vmatprep.subr.bf16.mxu1 %v553_v0  ;;  %v432_v41 = vpack.c.bf16 %v78_v40, %v77_v39  ;;  %v80_v43 = vld [vmem:[#allocation5 + $0xd8] sm:$0xff]  ;;  %v81_v45 = vld [vmem:[#allocation5 + $0xe0] sm:$0xff]  ;;  %v82_v46 = vld [vmem:[#allocation5 + $0xe8] sm:$0xff] }
  0x41   :  { %v435_v44 = vpack.c.bf16 %v80_v43, %v79_v42  ;;  %v438_v47 = vpack.c.bf16 %v82_v46, %v81_v45  ;;  %v83_v48 = vld [vmem:[#allocation5 + $0xf0] sm:$0xff]  ;;  %v84_v49 = vld [vmem:[#allocation5 + $0xf8] sm:$0xff]  ;;  %v289_v51 = vld [vmem:[#allocation7] ss:$0 sm:$0xff] }
  0x42   :  { %403 = vmatpush3.bf16.msra.mxu0 %v402_v10  ;;  %v441_v50 = vpack.c.bf16 %v84_v49, %v83_v48  ;;  %v87_v17 = vld [vmem:[#allocation7 + $0x2] sm:$0x1]  ;;  %v290_v24 = vld [vmem:[#allocation7 + $0x3] ss:$0 sm:$0xff] }
  0x43   :  { %404 = vmatprep.subr.bf16.mxu0 %v553_v0  ;;  %424 = vmatpush3.bf16.msra.mxu1 %v423_v32 }
  0x44   :  { %425 = vmatprep.subr.bf16.mxu1 %v553_v0 }
  0x46   :  { %406 = vmatpush3.bf16.msra.mxu0 %v405_v13  ;;  %v86_v13 = vld [vmem:[#allocation7 + $0x1] sm:$0x1] }
  0x47   :  { %407 = vmatprep.subr.bf16.mxu0 %v553_v0  ;;  %427 = vmatpush3.bf16.msra.mxu1 %v426_v35 }
  0x48   :  { %428 = vmatprep.subr.bf16.mxu1 %v553_v0 }
  0x4a   :  { %409 = vmatpush3.bf16.msra.mxu0 %v408_v16 }
  0x4b   :  { %410 = vmatprep.subr.bf16.mxu0 %v553_v0  ;;  %430 = vmatpush3.bf16.msra.mxu1 %v429_v38 }
  0x4c   :  { %431 = vmatprep.subr.bf16.mxu1 %v553_v0 }
  0x4e   :  { %412 = vmatpush3.bf16.msra.mxu0 %v411_v19 }
  0x4f   :  { %413 = vmatprep.subr.bf16.mxu0 %v553_v0  ;;  %433 = vmatpush3.bf16.msra.mxu1 %v432_v41 }
  0x50   :  { %434 = vmatprep.subr.bf16.mxu1 %v553_v0 }
  0x52   :  { %415 = vmatpush3.bf16.msra.mxu0 %v414_v22 }
  0x53   :  { %416 = vmatprep.subr.bf16.mxu0 %v553_v0  ;;  %436 = vmatpush3.bf16.msra.mxu1 %v435_v44 }
  0x54   :  { %437 = vmatprep.subr.bf16.mxu1 %v553_v0 }
  0x56   :  { %418 = vmatpush3.bf16.msra.mxu0 %v417_v25 }
  0x57   :  { %439 = vmatpush3.bf16.msra.mxu1 %v438_v47 }
  0x58   :  { %440 = vmatprep.subr.bf16.mxu1 %v553_v0 }
  0x59   :  { %358 = vmatmul.mubr.f32.vlgmr.msra.gmra.mrb[0].mxu0 %v52_v26 }
  0x5b   :  { %442 = vmatpush3.bf16.msra.mxu1 %v441_v50 }
 0x12c   :  { %v159_v52 = vpop.f32.mrb[0].mxu0 }
 0x12d   :  { %v160_v53 = vadd.f32 %v289_v51, %v159_v52  ;;  %v359_v54 = vpop.f32.mrb[1].mxu0 }
 0x12f   :  { %v163_v55 = vmax.f32 %v160_v53, 0.0 }
 0x131   :  { %v164_v56 = vrot.slane %v163_v55, 4  ;;  %v171_v57 = vmul.f32 %v163_v55, %v163_v55 }
 0x133   :  { %v165_v58 = vadd.f32 %v164_v56, %v163_v55  ;;  %v172_v59 = vrot.slane %v171_v57, 4 }
 0x135   :  { %v166_v60 = vrot.slane %v165_v58, 2  ;;  %v173_v61 = vadd.f32 %v172_v59, %v171_v57 }
 0x137   :  { %v167_v62 = vadd.f32 %v166_v60, %v165_v58  ;;  %v174_v63 = vrot.slane %v173_v61, 2 }
 0x139   :  { %v168_v1 = vrot.slane %v167_v62, 1  ;;  %v175_v2 = vadd.f32 %v174_v63, %v173_v61 }
 0x13b   :  { %v176_v3 = vrot.slane %v175_v2, 1  ;;  %v169_v4 = vadd.f32 %v168_v1, %v167_v62 }
 0x13d   :  { %v177_v5 = vadd.f32 %v176_v3, %v175_v2  ;;  %v170_v0 = vmul.f32 0.125, %v169_v4 }
 0x13f   :  { %v178_v6 = vmul.f32 0.125, %v177_v5  ;;  %v179_v7 = vmul.f32 %v170_v0, %v170_v0 }
 0x141   :  { %v180_v8 = vsub.f32 %v178_v6, %v179_v7 }
 0x143   :  { %v181_v9 = vmax.f32 %v180_v8, 0.0 }
 0x145   :  { %v182_v10 = vadd.f32 1e-05, %v181_v9 }
 0x147   :  { %452 = vrsqrt.f32 %v182_v10 }
 0x151   :  { %v453_v15 = vpop.eup %452 }
 0x152   :  { %v184_v16 = vmul.f32 %v453_v15, %v86_v13 }
 0x154   :  { %v185_v18 = vmul.f32 %v184_v16, %v170_v0  ;;  %v190_v19 = vrot.slane %v184_v16, %v189_v14 }
 0x156   :  { %v186_v20 = vsub.f32 %v87_v17, %v185_v18  ;;  %v191_v21 = vmul.f32 %v190_v19, %v163_v55 }
 0x158   :  { %v195_v22 = vrot.slane %v186_v20, %v189_v14 }
 0x15a   :  { %v196_v23 = vadd.f32 %v195_v22, %v191_v21 }
 0x15c   :  { %393 = vmatmul.mubr.f32.vlgmr.msra.gmra.mrb[0].mxu1 %v196_v23 }
 0x22f   :  { %v267_v25 = vpop.f32.mrb[0].mxu1 }
 0x230   :  { %v268_v26 = vadd.f32 %v290_v24, %v267_v25  ;;  %v394_v27 = vpop.f32.mrb[1].mxu1 }
 0x232   :  { %272 = vst.msk [vmem:[#allocation8] sm:$0xff] %vm271_vm1, %v268_v26 }
 0x233   :  { %531 = shalt.err (!%p528_p0)
}
 0x234   :  { %s532_s25 = scalar_lea.hbm %s644_s3, 128 }
 0x235   :  { %p533_p1 = scmp.ne.s32.totalorder %s644_s3, %s532_s25  ;;  %p536_p2 = scmp.lt.u32.totalorder %s532_s25, %s644_s3 }
 0x237   :  { %p538_p3 = pnand %p536_p2, %p533_p1 }
 0x239   :  { %541 = shalt.err (!%p538_p3)
}
 0x23a   :  { %282 = dma.vmem_to_hbm [thread:$0]  %s280_s21, 128, %s644_s3, [#allocation4]  }
 0x23b   :  { %546 = dma.done.wait [#allocation4], 128  }
 0x23c   :  { %547 = vsyncadd [#allocation4], 4294967168 }
 0x23d   :  { %286 = vsyncpa [#allocation3], 1 }
 0x23e   :  { %287 = vsyncpa [#allocation6], 1 }
 0x23f   :  { %288 = vsyncpa [#allocation4], 1 }

</bundles_post_ra>
